<compile_context>
chip_gen: v7x
topology: tpu7x:2x2x1
jax: 0.10.0
libtpu: 0.0.40
codegen_flags: <defaults>
</compile_context>

<pallas_src>
import jax
import jax.numpy as jnp
from jax.experimental import pallas as pl
from jax.experimental.pallas import tpu as pltpu

_SPATIAL_CHUNK = 2048  # lanes per in-kernel single-pass reduction chunk


# ----------------------------------------------------------------------------
# Kernel
# ----------------------------------------------------------------------------
def _make_kernel(inv_hw, chunk):
    def kernel(x_ref, w1_ref, w2_ref, o_ref, sum_sc, max_sc):
        # x_ref block: (TB, C, THW); w1_ref: (C, hidden); w2_ref: (hidden, C)
        # o_ref block: (TB, C); scratch: (TB, C) f32 partial sum / running max
        s = pl.program_id(1)

        @pl.when(s == 0)
        def _init():
            sum_sc[...] = jnp.zeros_like(sum_sc)
            max_sc[...] = jnp.full_like(max_sc, -jnp.inf)

        thw = x_ref.shape[2]
        # Single-pass chunked cast + sum + max: avoids materializing a
        # full-block f32 temp (matters for bf16 inputs) and reads each
        # element exactly once.  Static slices -> no dynamic-index lowering.
        part_sum = None
        part_max = None
        for k in range(0, thw, chunk):
            n = min(chunk, thw - k)
            blk = x_ref[:, :, pl.ds(k, n)].astype(jnp.float32)  # (TB, C, n)
            ps = jnp.sum(blk, axis=2)                           # (TB, C)
            pm = jnp.max(blk, axis=2)                           # (TB, C)
            part_sum = ps if part_sum is None else part_sum + ps
            part_max = pm if part_max is None else jnp.maximum(part_max, pm)

        sum_sc[...] = sum_sc[...] + part_sum
        max_sc[...] = jnp.maximum(max_sc[...], part_max)

        @pl.when(s == pl.num_programs(1) - 1)
        def _finalize():
            avg = sum_sc[...] * inv_hw                          # (TB, C)
            mx = max_sc[...]                                    # (TB, C)
            w1 = w1_ref[...]                                    # (C, hidden)
            w2 = w2_ref[...]                                    # (hidden, C)
            # fc1 on each pooled tensor (no concat -> no sublane relayout),
            # fc2 fused via distributivity (exact in exact arithmetic).
            h = (jnp.maximum(jnp.dot(avg, w1,
                                     preferred_element_type=jnp.float32), 0.0)
                 + jnp.maximum(jnp.dot(mx, w1,
                                       preferred_element_type=jnp.float32), 0.0))
            out = jnp.dot(h, w2, preferred_element_type=jnp.float32)  # (TB, C)
            o_ref[...] = jax.nn.sigmoid(out).astype(o_ref.dtype)

    return kernel


# ----------------------------------------------------------------------------
# Per-chip / tiling heuristics
# ----------------------------------------------------------------------------
def _vmem_capacity_bytes():
    try:
        info = pltpu.get_tpu_info()
        cap = getattr(info, "vmem_capacity_bytes", None)
        if cap:
            return int(cap)
    except Exception:
        pass
    return 64 * 1024 * 1024  # safe lower bound (v7x per-TC VMEM)


def _tensorcores_per_chip():
    # v7x has 2 TensorCores per chip; v5e/v6e have 1.
    try:
        kind = (jax.devices()[0].device_kind or "").lower()
        if "v7" in kind:
            return 2
    except Exception:
        pass
    return 1


def _choose_spatial_tile(HW, C, itemsize, budget_bytes):
    """Largest divisor of HW (lane-aligned or full) whose double-buffered
    input tile at TB=1 fits the VMEM budget."""
    def fits(t):
        return 2 * C * t * itemsize <= budget_bytes
    if fits(HW):
        return HW
    best = None
    for t in range(128, HW, 128):          # multiples of 128 (lane aligned)
        if HW % t == 0 and fits(t):
            best = t
    if best is not None:
        return best
    for t in range(128, HW, 128):          # fallback: smallest aligned divisor
        if HW % t == 0:
            return t
    return HW                               # no aligned divisor: full extent


def _choose_batch_tile(B, C, thw, itemsize, budget_bytes, cores):
    """Largest divisor of B whose per-step VMEM footprint fits the budget.
    Prefers (a) batch-step counts that are a multiple of the TensorCore count
    (megacore split on v7x), (b) sublane-friendly TB (multiple of 8 / full B)."""
    chunk = min(thw, _SPATIAL_CHUNK)
    per_img = 2 * C * thw * itemsize + 2 * C * chunk * 4  # DMA dbl-buf + f32 work
    cap = max(1, budget_bytes // per_img)
    cap = min(cap, B)
    divisors = [d for d in range(1, cap + 1) if B % d == 0]

    def score(d):
        steps = B // d
        even_cores = (steps % cores == 0) if cores > 1 else True
        sublane_ok = (d % 8 == 0) or (d == B)
        return (even_cores, sublane_ok, d)

    return max(divisors, key=score)


# ----------------------------------------------------------------------------
# Wrapper
# ----------------------------------------------------------------------------
def channel_attention(x, w1, w2, *, batch_tile=None, spatial_tile=None):
    """x: (B, C, H, W) fp32/bf16; w1: (hidden, C) fc1 weight; w2: (C, hidden)
    fc2 weight (1x1 convs with bias=False == matmuls).
    Returns sigmoid channel attention of shape (B, C, 1, 1)."""
    B, C, H, W = x.shape
    hidden = w1.shape[0]
    HW = H * W

    x_flat = x.reshape(B, C, HW)
    w1_t = jnp.asarray(w1, dtype=jnp.float32).T    # (C, hidden)
    w2_t = jnp.asarray(w2, dtype=jnp.float32).T    # (hidden, C)

    itemsize = jnp.dtype(x.dtype).itemsize
    vmem_cap = _vmem_capacity_bytes()
    vmem_limit = int(min(vmem_cap * 3 // 4, 112 * 1024 * 1024))
    budget = (vmem_limit * 3) // 5
    cores = _tensorcores_per_chip()

    thw = spatial_tile if spatial_tile is not None else _choose_spatial_tile(
        HW, C, itemsize, budget)
    tb = batch_tile if batch_tile is not None else _choose_batch_tile(
        B, C, thw, itemsize, budget, cores)
    assert HW % thw == 0 and B % tb == 0

    grid = (B // tb, HW // thw)
    kernel = _make_kernel(1.0 / HW, min(thw, _SPATIAL_CHUNK))

    out = pl.pallas_call(
        kernel,
        out_shape=jax.ShapeDtypeStruct((B, C), x.dtype),
        grid_spec=pltpu.PrefetchScalarGridSpec(
            num_scalar_prefetch=0,
            grid=grid,
            in_specs=[
                pl.BlockSpec((tb, C, thw), lambda b, s: (b, 0, s)),
                pl.BlockSpec((C, hidden), lambda b, s: (0, 0)),
                pl.BlockSpec((hidden, C), lambda b, s: (0, 0)),
            ],
            out_specs=pl.BlockSpec((tb, C), lambda b, s: (b, 0)),
            scratch_shapes=[
                pltpu.VMEM((tb, C), jnp.float32),   # partial sum
                pltpu.VMEM((tb, C), jnp.float32),   # running max
            ],
        ),
        compiler_params=pltpu.CompilerParams(
            dimension_semantics=("parallel", "arbitrary"),
            vmem_limit_bytes=vmem_limit,
        ),
    )(x_flat, w1_t, w2_t)

    return out.reshape(B, C, 1, 1)


# ----------------------------------------------------------------------------
# Pure-JAX reference (matches the PyTorch module)
# ----------------------------------------------------------------------------
def channel_attention_ref(x, w1, w2):
    xf = x.astype(jnp.float32)
    avg = jnp.mean(xf, axis=(2, 3))          # (B, C)
    mx = jnp.max(xf, axis=(2, 3))            # (B, C)

    def branch(p):
        h = jnp.maximum(p @ w1.T, 0.0)       # (B, hidden)
        return h @ w2.T                      # (B, C)

    out = branch(avg) + branch(mx)
    return jax.nn.sigmoid(out)[:, :, None, None].astype(x.dtype)


# ----------------------------------------------------------------------------
# Tests
# ----------------------------------------------------------------------------
def _run_case(key, B, C, H, W, ratio, **kw):
    hidden = C // ratio
    kx, k1, k2 = jax.random.split(key, 3)
    x = jax.random.normal(kx, (B, C, H, W), dtype=jnp.float32)
    # Conv2d(C, hidden, 1, bias=False).weight: (hidden, C, 1, 1) -> (hidden, C)
    w1 = jax.random.normal(k1, (hidden, C), dtype=jnp.float32) * 0.1
    # Conv2d(hidden, C, 1, bias=False).weight: (C, hidden, 1, 1) -> (C, hidden)
    w2 = jax.random.normal(k2, (C, hidden), dtype=jnp.float32) * 0.1

    out = channel_attention(x, w1, w2, **kw)
    out = jax.block_until_ready(out)
    ref = channel_attention_ref(x, w1, w2)
    assert out.shape == (B, C, 1, 1)
    assert jnp.allclose(out, ref, atol=1e-5, rtol=1e-5)


if __name__ == "__main__":
    key = jax.random.PRNGKey(0)
    k_a, k_b, k_c = jax.random.split(key, 3)

    # Small case matching the module defaults (ratio=16 needs C >= 16).
    _run_case(k_a, B=2, C=64, H=16, W=16, ratio=16)
    # Larger batch: exercises the TB > 1 batched-tile path.
    _run_case(k_b, B=8, C=32, H=8, W=8, ratio=8)
    # Forced multi-step spatial axis: exercises the pl.when init / accumulate /
    # finalize path that handles large feature maps.
    _run_case(k_c, B=2, C=32, H=32, W=16, ratio=8, spatial_tile=128)

    print("KERNEL_OK")
</pallas_src>

<mosaic_0001>
module attributes {stable_mosaic.version = 11 : i64} {
  func.func @kernel(%arg0: i32, %arg1: i32, %arg2: memref<2x64x256xf32, #tpu.memory_space<vmem>>, %arg3: memref<64x4xf32, #tpu.memory_space<vmem>>, %arg4: memref<4x64xf32, #tpu.memory_space<vmem>>, %arg5: memref<2x64xf32, #tpu.memory_space<vmem>>, %arg6: memref<2x64xf32, #tpu.memory_space<vmem>>, %arg7: memref<2x64xf32, #tpu.memory_space<vmem>>) attributes {dimension_semantics = [#tpu.dimension_semantics<parallel>, #tpu.dimension_semantics<arbitrary>], iteration_bounds = array<i64: 1, 1>, scalar_prefetch = 0 : i64, scratch_operands = 2 : i64, tpu.core_type = #tpu.core_type<tc>, window_params = [{transform_indices = @transform_0, window_bounds = array<i64: 2, 64, 256>}, {pipeline_mode = #tpu.pipeline_mode<synchronous>, transform_indices = @transform_1, window_bounds = array<i64: 64, 4>}, {pipeline_mode = #tpu.pipeline_mode<synchronous>, transform_indices = @transform_2, window_bounds = array<i64: 4, 64>}, {transform_indices = @transform_3, window_bounds = array<i64: 2, 64>}]} {
    %c0_i32 = arith.constant 0 : i32
    %0 = arith.cmpi eq, %arg1, %c0_i32 : i32
    %1 = arith.extui %0 : i1 to i32
    %c0_i32_0 = arith.constant 0 : i32
    %2 = arith.cmpi ne, %1, %c0_i32_0 : i32
    scf.if %2 {
      %cst_14 = arith.constant 0.000000e+00 : f32
      %15 = vector.broadcast %cst_14 : f32 to vector<2x64xf32>
      %c0_15 = arith.constant 0 : index
      %c0_16 = arith.constant 0 : index
      %16 = vector.load %arg6[%c0_15, %c0_16] : memref<2x64xf32, #tpu.memory_space<vmem>>, vector<2x64xf32>
      tpu.vector_store %arg6[%c0_15, %c0_16], %15 {strides = array<i32>} : memref<2x64xf32, #tpu.memory_space<vmem>>, vector<2x64xf32>,
      %cst_17 = arith.constant 0xFF800000 : f32
      %17 = vector.broadcast %cst_17 : f32 to vector<2x64xf32>
      %c0_18 = arith.constant 0 : index
      %c0_19 = arith.constant 0 : index
      %18 = vector.load %arg7[%c0_18, %c0_19] : memref<2x64xf32, #tpu.memory_space<vmem>>, vector<2x64xf32>
      tpu.vector_store %arg7[%c0_18, %c0_19], %17 {strides = array<i32>} : memref<2x64xf32, #tpu.memory_space<vmem>>, vector<2x64xf32>,
    } else {
    }
    %c0 = arith.constant 0 : index
    %c0_1 = arith.constant 0 : index
    %c0_2 = arith.constant 0 : index
    %3 = vector.load %arg2[%c0, %c0_1, %c0_2] : memref<2x64x256xf32, #tpu.memory_space<vmem>>, vector<2x64x256xf32>
    %cst = arith.constant dense<0.000000e+00> : vector<2x64xf32>
    %4 = vector.multi_reduction <add>, %3, %cst [2] : vector<2x64x256xf32> to vector<2x64xf32>
    %cst_3 = arith.constant dense<0xFF800000> : vector<2x64xf32>
    %5 = vector.multi_reduction <maximumf>, %3, %cst_3 [2] : vector<2x64x256xf32> to vector<2x64xf32>
    %c0_4 = arith.constant 0 : index
    %c0_5 = arith.constant 0 : index
    %6 = vector.load %arg6[%c0_4, %c0_5] : memref<2x64xf32, #tpu.memory_space<vmem>>, vector<2x64xf32>
    %7 = arith.addf %6, %4 : vector<2x64xf32>
    %c0_6 = arith.constant 0 : index
    %c0_7 = arith.constant 0 : index
    %8 = vector.load %arg6[%c0_6, %c0_7] : memref<2x64xf32, #tpu.memory_space<vmem>>, vector<2x64xf32>
    tpu.vector_store %arg6[%c0_6, %c0_7], %7 {strides = array<i32>} : memref<2x64xf32, #tpu.memory_space<vmem>>, vector<2x64xf32>,
    %c0_8 = arith.constant 0 : index
    %c0_9 = arith.constant 0 : index
    %9 = vector.load %arg7[%c0_8, %c0_9] : memref<2x64xf32, #tpu.memory_space<vmem>>, vector<2x64xf32>
    %10 = arith.maximumf %9, %5 : vector<2x64xf32>
    %c0_10 = arith.constant 0 : index
    %c0_11 = arith.constant 0 : index
    %11 = vector.load %arg7[%c0_10, %c0_11] : memref<2x64xf32, #tpu.memory_space<vmem>>, vector<2x64xf32>
    tpu.vector_store %arg7[%c0_10, %c0_11], %10 {strides = array<i32>} : memref<2x64xf32, #tpu.memory_space<vmem>>, vector<2x64xf32>,
    %c0_i32_12 = arith.constant 0 : i32
    %12 = arith.cmpi eq, %arg1, %c0_i32_12 : i32
    %13 = arith.extui %12 : i1 to i32
    %c0_i32_13 = arith.constant 0 : i32
    %14 = arith.cmpi ne, %13, %c0_i32_13 : i32
    scf.if %14 {
      %c0_14 = arith.constant 0 : index
      %c0_15 = arith.constant 0 : index
      %15 = vector.load %arg6[%c0_14, %c0_15] : memref<2x64xf32, #tpu.memory_space<vmem>>, vector<2x64xf32>
      %cst_16 = arith.constant 3.906250e-03 : f32
      %16 = vector.broadcast %cst_16 : f32 to vector<2x64xf32>
      %17 = arith.mulf %15, %16 : vector<2x64xf32>
      %c0_17 = arith.constant 0 : index
      %c0_18 = arith.constant 0 : index
      %18 = vector.load %arg7[%c0_17, %c0_18] : memref<2x64xf32, #tpu.memory_space<vmem>>, vector<2x64xf32>
      %c0_19 = arith.constant 0 : index
      %c0_20 = arith.constant 0 : index
      %19 = vector.load %arg3[%c0_19, %c0_20] : memref<64x4xf32, #tpu.memory_space<vmem>>, vector<64x4xf32>
      %c0_21 = arith.constant 0 : index
      %c0_22 = arith.constant 0 : index
      %20 = vector.load %arg4[%c0_21, %c0_22] : memref<4x64xf32, #tpu.memory_space<vmem>>, vector<4x64xf32>
      %cst_23 = arith.constant dense<0.000000e+00> : vector<2x4xf32>
      %21 = tpu.matmul %17, %19, %cst_23 {dimension_numbers = #tpu.dot_dimension_numbers<[1], [0], [0], [1], [0, 0, 1, 1], [], []>} : vector<2x64xf32>, vector<64x4xf32>, vector<2x4xf32> -> vector<2x4xf32>
      %cst_24 = arith.constant 0.000000e+00 : f32
      %22 = vector.broadcast %cst_24 : f32 to vector<2x4xf32>
      %23 = arith.maximumf %21, %22 : vector<2x4xf32>
      %cst_25 = arith.constant dense<0.000000e+00> : vector<2x4xf32>
      %24 = tpu.matmul %18, %19, %cst_25 {dimension_numbers = #tpu.dot_dimension_numbers<[1], [0], [0], [1], [0, 0, 1, 1], [], []>} : vector<2x64xf32>, vector<64x4xf32>, vector<2x4xf32> -> vector<2x4xf32>
      %cst_26 = arith.constant 0.000000e+00 : f32
      %25 = vector.broadcast %cst_26 : f32 to vector<2x4xf32>
      %26 = arith.maximumf %24, %25 : vector<2x4xf32>
      %27 = arith.addf %23, %26 : vector<2x4xf32>
      %cst_27 = arith.constant dense<0.000000e+00> : vector<2x64xf32>
      %28 = tpu.matmul %27, %20, %cst_27 {dimension_numbers = #tpu.dot_dimension_numbers<[1], [0], [0], [1], [0, 0, 1, 1], [], []>} : vector<2x4xf32>, vector<4x64xf32>, vector<2x64xf32> -> vector<2x64xf32>
      %29 = arith.negf %28 : vector<2x64xf32>
      %30 = math.exp %29 : vector<2x64xf32>
      %cst_28 = arith.constant 1.000000e+00 : f32
      %31 = vector.broadcast %cst_28 : f32 to vector<2x64xf32>
      %32 = arith.addf %31, %30 : vector<2x64xf32>
      %33 = arith.divf %31, %32 : vector<2x64xf32>
      %c0_29 = arith.constant 0 : index
      %c0_30 = arith.constant 0 : index
      %34 = vector.load %arg5[%c0_29, %c0_30] : memref<2x64xf32, #tpu.memory_space<vmem>>, vector<2x64xf32>
      tpu.vector_store %arg5[%c0_29, %c0_30], %33 {strides = array<i32>} : memref<2x64xf32, #tpu.memory_space<vmem>>, vector<2x64xf32>,
    } else {
    }
    return
  }
  func.func @transform_0(%arg0: i32, %arg1: i32) -> (i32, i32, i32) {
    %c0_i32 = arith.constant 0 : i32
    %c0_i32_0 = arith.constant 0 : i32
    return %arg0, %c0_i32, %arg1 : i32, i32, i32
  }
  func.func @transform_1(%arg0: i32, %arg1: i32) -> (i32, i32) {
    %c0_i32 = arith.constant 0 : i32
    %c0_i32_0 = arith.constant 0 : i32
    %c0_i32_1 = arith.constant 0 : i32
    return %c0_i32, %c0_i32_0 : i32, i32
  }
  func.func @transform_2(%arg0: i32, %arg1: i32) -> (i32, i32) {
    %c0_i32 = arith.constant 0 : i32
    %c0_i32_0 = arith.constant 0 : i32
    %c0_i32_1 = arith.constant 0 : i32
    return %c0_i32, %c0_i32_0 : i32, i32
  }
  func.func @transform_3(%arg0: i32, %arg1: i32) -> (i32, i32) {
    %c0_i32 = arith.constant 0 : i32
    %c0_i32_0 = arith.constant 0 : i32
    return %arg0, %c0_i32 : i32, i32
  }
}

</mosaic_0001>

<bundles_post_ra>
// kernel: tpu_custom_call.1
= control target key start
LH: loop header
LB: loop body
LE: loop exit
PB: predicated region body
PF: predicated region fallthrough
CT: control target
= control target key end

     0   :  { %8 = vsyncpa [#allocation5], 0  ;;  %s991_s0 = inlined_call_operand.hbm [shape: f32[2,64,256], index: 0, kind: input, shape index: {}]   ;;  %s992_s1 = inlined_call_operand.vmem [shape: f32[64,4], index: 1, kind: input, shape index: {}]   ;;  %s993_s2 = inlined_call_operand.vmem [shape: f32[4,64], index: 2, kind: input, shape index: {}]   ;;  %s994_s3 = inlined_call_operand.hbm [shape: f32[2,64], index: 3, kind: output, shape index: {}]  }
   0x1   :  { %9 = vsyncpa [#allocation6], 0  ;;  %s797_s12 = smov [#allocation4]   ;;  %s749_s16 = scalar_lea.hbm %s991_s0, 4096 }
   0x2   :  { %s15_s13 = sshll.u32 %s797_s12, 4  ;;  %p750_p0 = scmp.ne.s32.totalorder %s991_s0, %s749_s16  ;;  %s16_s13 = int_to_ptr.vmem [resolvable:$true] %s15_s13 }
   0x3   :  { %p753_p1 = scmp.lt.u32.totalorder %s749_s16, %s991_s0 }
   0x5   :  { %p755_p2 = pnand %p753_p1, %p750_p0 }
   0x7   :  { %758 = shalt.err (!%p755_p2)
}
   0x8   :  { %s759_s21 = scalar_lea.vmem %s16_s13, 4096  ;;  %p764_p4 = scmp.lt.s32.totalorder %s16_s13, %s16_s13 }
   0x9   :  { %p760_p3 = scmp.ne.s32.totalorder %s16_s13, %s759_s21  ;;  %p765_p5 = scmp.lt.s32.totalorder %s759_s21, %s759_s21 }
   0xb   :  { %p766_p6 = por %p765_p5, %p764_p4 }
   0xd   :  { %p767_p7 = pnand %p766_p6, %p760_p3 }
   0xf   :  { %770 = shalt.err (!%p767_p7)
}
  0x10   :  { %s798_s22 = smov 256   ;;  %s799_s23 = smov 16  }
  0x11   :  { %21 = dma.hbm_to_vmem [thread:$0]  %s991_s0, 4096, %s16_s13, [#allocation5], %s798_s22, %s798_s22, %s799_s23  }
  0x12   :  { %793 = dma.done.wait [#allocation5], 4096  }
  0x13   :  { %794 = vsyncadd [#allocation5], 4294963200  ;;  %v52_v0 = vld [vmem:[#allocation4 + $0x80] sm:$0xff]  ;;  %v53_v1 = vld [vmem:[#allocation4 + $0x88] sm:$0xff]  ;;  %vm33_vm0 = vcmask 517120   ;;  %vm803_vm1 = vmmov 0  }
  0x14   :  { %v36_v2 = vld [vmem:[#allocation4] sm:$0xff]  ;;  %v92_v3 = vadd.f32 %v53_v1, %v52_v0  ;;  %v37_v4 = vld [vmem:[#allocation4 + $0x8] sm:$0xff]  ;;  %v54_v5 = vld [vmem:[#allocation4 + $0x90] sm:$0xff]  ;;  %v140_v27 = vmax.f32 %v52_v0, %v53_v1  ;;  %v800_v0 = vmov 0.0   ;;  %vm192_vm2 = vcmask 130112   ;;  %s804_s15 = smov [#allocation7]  }
  0x15   :  { %v55_v6 = vld [vmem:[#allocation4 + $0x98] sm:$0xff]  ;;  %v68_v7 = vadd.f32 %v37_v4, %v36_v2  ;;  %v38_v8 = vld [vmem:[#allocation4 + $0x10] sm:$0xff]  ;;  %v56_v12 = vld [vmem:[#allocation4 + $0xa0] sm:$0xff]  ;;  %v116_v25 = vmax.f32 %v36_v2, %v37_v4  ;;  %34 = vst.msk [vmem:[#allocation2] sm:$0x3] %vm33_vm0, %v800_v0  ;;  %v801_v4 = vmov 0.0|0.0   ;;  %686 = vmatprep.mubr.msk.f32.mxu0 %vm803_vm1, %v800_v0  ;;  %705 = vmatprep.mubr.msk.f32.mxu1 %vm803_vm1, %v800_v0 }
  0x16   :  { %v39_v9 = vld [vmem:[#allocation4 + $0x18] sm:$0xff]  ;;  %93 = vadd.xlane.f32.xlu1 %v92_v3  ;;  %v95_v10 = vadd.f32 %v55_v6, %v54_v5  ;;  %v57_v13 = vld [vmem:[#allocation4 + $0xa8] sm:$0xff]  ;;  %v40_v14 = vld [vmem:[#allocation4 + $0x20] sm:$0xff]  ;;  %v143_v26 = vmax.f32 %v54_v5, %v55_v6  ;;  %713 = vmatprep.subr.bf16.mxu0 %v801_v4  ;;  %vm199_vm3 = vcmask 195712   ;;  %vm206_vm4 = vcmask 261312  }
  0x17   :  { %69 = vadd.xlane.f32.xlu0 %v68_v7  ;;  %v71_v11 = vadd.f32 %v39_v9, %v38_v8  ;;  %v41_v15 = vld [vmem:[#allocation4 + $0x28] sm:$0xff]  ;;  %v98_v16 = vadd.f32 %v57_v13, %v56_v12  ;;  %v58_v18 = vld [vmem:[#allocation4 + $0xb0] sm:$0xff]  ;;  %v59_v19 = vld [vmem:[#allocation4 + $0xb8] sm:$0xff]  ;;  %v119_v24 = vmax.f32 %v38_v8, %v39_v9  ;;  %v146_v34 = vmax.f32 %v56_v12, %v57_v13 }
  0x18   :  { %v74_v17 = vadd.f32 %v41_v15, %v40_v14  ;;  %v42_v20 = vld [vmem:[#allocation4 + $0x30] sm:$0xff]  ;;  %v43_v21 = vld [vmem:[#allocation4 + $0x38] sm:$0xff]  ;;  %v101_v22 = vadd.f32 %v59_v19, %v58_v18  ;;  %v60_v28 = vld [vmem:[#allocation4 + $0xc0] sm:$0xff]  ;;  %v122_v35 = vmax.f32 %v40_v14, %v41_v15  ;;  %v149_v42 = vmax.f32 %v58_v18, %v59_v19  ;;  %725 = vmatprep.subr.bf16.mxu1 %v801_v4 }
  0x19   :  { %v77_v23 = vadd.f32 %v43_v21, %v42_v20  ;;  %v61_v29 = vld [vmem:[#allocation4 + $0xc8] sm:$0xff]  ;;  %v44_v30 = vld [vmem:[#allocation4 + $0x40] sm:$0xff]  ;;  %v62_v36 = vld [vmem:[#allocation4 + $0xd0] sm:$0xff]  ;;  %v125_v43 = vmax.f32 %v42_v20, %v43_v21  ;;  %vm213_vm5 = vcmask 326912   ;;  %vm220_vm6 = vcmask 392512  }
  0x1a   :  { %96 = vadd.xlane.f32.xlu1 %v95_v10  ;;  %v45_v31 = vld [vmem:[#allocation4 + $0x48] sm:$0xff]  ;;  %v104_v32 = vadd.f32 %v61_v29, %v60_v28  ;;  %v63_v37 = vld [vmem:[#allocation4 + $0xd8] sm:$0xff]  ;;  %v46_v38 = vld [vmem:[#allocation4 + $0x50] sm:$0xff]  ;;  %v152_v50 = vmax.f32 %v60_v28, %v61_v29  ;;  %v181_v29 = vlaneseq  ;;  %vm227_vm7 = vcmask 458112  }
  0x1b   :  { %72 = vadd.xlane.f32.xlu0 %v71_v11  ;;  %v80_v33 = vadd.f32 %v45_v31, %v44_v30  ;;  %v47_v39 = vld [vmem:[#allocation4 + $0x58] sm:$0xff]  ;;  %v107_v40 = vadd.f32 %v63_v37, %v62_v36  ;;  %v64_v44 = vld [vmem:[#allocation4 + $0xe0] sm:$0xff]  ;;  %v65_v45 = vld [vmem:[#allocation4 + $0xe8] sm:$0xff]  ;;  %v128_v51 = vmax.f32 %v44_v30, %v45_v31  ;;  %v155_v58 = vmax.f32 %v62_v36, %v63_v37 }
  0x1c   :  { %v83_v41 = vadd.f32 %v47_v39, %v46_v38  ;;  %v48_v46 = vld [vmem:[#allocation4 + $0x60] sm:$0xff]  ;;  %v49_v47 = vld [vmem:[#allocation4 + $0x68] sm:$0xff]  ;;  %v110_v48 = vadd.f32 %v65_v45, %v64_v44  ;;  %v66_v52 = vld [vmem:[#allocation4 + $0xf0] sm:$0xff]  ;;  %v131_v59 = vmax.f32 %v46_v38, %v47_v39  ;;  %v158_v60 = vmax.f32 %v64_v44, %v65_v45 }
  0x1d   :  { %v86_v49 = vadd.f32 %v49_v47, %v48_v46  ;;  %v67_v53 = vld [vmem:[#allocation4 + $0xf8] sm:$0xff]  ;;  %v50_v54 = vld [vmem:[#allocation4 + $0x70] sm:$0xff]  ;;  %v134_v61 = vmax.f32 %v48_v46, %v49_v47  ;;  %v387_v2 = vld [vmem:[%s992_s1 + $0x8] sm:$0xff]  ;;  %v802_v11 = vmov -inf   ;;  %v184_v37 = vshrl.u32 %v181_v29, 7 }
  0x1e   :  { %99 = vadd.xlane.f32.xlu1 %v98_v16  ;;  %v51_v55 = vld [vmem:[#allocation4 + $0x78] sm:$0xff]  ;;  %v113_v56 = vadd.f32 %v67_v53, %v66_v52  ;;  %v161_v62 = vmax.f32 %v66_v52, %v67_v53  ;;  %v388_v5 = vld [vmem:[%s992_s1 + $0x10] sm:$0xff]  ;;  %v391_v9 = vld [vmem:[%s992_s1 + $0x28] sm:$0xff]  ;;  %35 = vst.msk [vmem:[#allocation3] sm:$0x3] %vm33_vm0, %v802_v11  ;;  %vm234_vm8 = vcmask 523712  }
  0x1f   :  { %75 = vadd.xlane.f32.xlu0 %v74_v17  ;;  %v89_v57 = vadd.f32 %v51_v55, %v50_v54  ;;  %v137_v63 = vmax.f32 %v50_v54, %v51_v55  ;;  %v386_v1 = vld [vmem:[%s992_s1] sm:$0xff]  ;;  %v389_v6 = vld [vmem:[%s992_s1 + $0x18] sm:$0xff]  ;;  %v392_v12 = vld [vmem:[%s992_s1 + $0x30] sm:$0xff]  ;;  %vm275_vm9 = vcmask 1041409   ;;  %vm395_vm10 = vcmask 523264  }
  0x20   :  { %v714_v3 = vpack.c.bf16 %v387_v2, %v386_v1  ;;  %v717_v7 = vpack.c.bf16 %v389_v6, %v388_v5  ;;  %v390_v8 = vld [vmem:[%s992_s1 + $0x20] sm:$0xff]  ;;  %v393_v13 = vld [vmem:[%s992_s1 + $0x38] sm:$0xff]  ;;  %vm549_vm11 = vcmask 1043456   ;;  %vm545_vm12 = vcmask 31744  }
  0x21   :  { %v720_v10 = vpack.c.bf16 %v391_v9, %v390_v8  ;;  %v723_v14 = vpack.c.bf16 %v393_v13, %v392_v12 }
  0x22   :  { %102 = vadd.xlane.f32.xlu1 %v101_v22  ;;  %715 = vmatpush3.bf16.msra.mxu0 %v714_v3 }
  0x23   :  { %78 = vadd.xlane.f32.xlu0 %v77_v23  ;;  %727 = vmatpush3.bf16.msra.mxu1 %v714_v3 }
  0x24   :  { %716 = vmatprep.subr.bf16.mxu0 %v801_v4  ;;  %728 = vmatprep.subr.bf16.mxu1 %v801_v4 }
  0x26   :  { %120 = vmax.xlane.f32.xlu1 %v119_v24  ;;  %718 = vmatpush3.bf16.msra.mxu0 %v717_v7 }
  0x27   :  { %117 = vmax.xlane.f32.xlu0 %v116_v25  ;;  %730 = vmatpush3.bf16.msra.mxu1 %v717_v7 }
  0x28   :  { %719 = vmatprep.subr.bf16.mxu0 %v801_v4  ;;  %731 = vmatprep.subr.bf16.mxu1 %v801_v4 }
  0x2a   :  { %144 = vmax.xlane.f32.xlu1 %v143_v26  ;;  %721 = vmatpush3.bf16.msra.mxu0 %v720_v10 }
  0x2b   :  { %141 = vmax.xlane.f32.xlu0 %v140_v27  ;;  %733 = vmatpush3.bf16.msra.mxu1 %v720_v10 }
  0x2c   :  { %722 = vmatprep.subr.bf16.mxu0 %v801_v4  ;;  %734 = vmatprep.subr.bf16.mxu1 %v801_v4 }
  0x2e   :  { %105 = vadd.xlane.f32.xlu1 %v104_v32  ;;  %724 = vmatpush3.bf16.msra.mxu0 %v723_v14  ;;  %v182_v32 = vand.u32 127, %v181_v29  ;;  %v164_v29 = vld [vmem:[#allocation2] sm:$0x3] }
  0x2f   :  { %81 = vadd.xlane.f32.xlu0 %v80_v33  ;;  %736 = vmatpush3.bf16.msra.mxu1 %v723_v14 }
  0x30   :  { %708 = vmatprep.subr.mxu0 %v800_v0  ;;  %v194_v36 = vadd.s32 4294967280, %v182_v32  ;;  %v201_v38 = vadd.s32 4294967272, %v182_v32  ;;  %v208_v39 = vadd.s32 4294967264, %v182_v32  ;;  %v222_v45 = vadd.s32 4294967248, %v182_v32 }
  0x31   :  { %v889_v46 = vsub.s32 %v182_v32, %v184_v37  ;;  %v229_v53 = vadd.s32 4294967240, %v182_v32 }
  0x32   :  { %147 = vmax.xlane.f32.xlu1 %v146_v34  ;;  %v187_v34 = vadd.s32 4294967288, %v182_v32  ;;  %v887_v44 = vsub.s32 %v194_v36, %v184_v37  ;;  %v891_v47 = vsub.s32 %v201_v38, %v184_v37 }
  0x33   :  { %123 = vmax.xlane.f32.xlu0 %v122_v35  ;;  %v911_v5 = vsub.s32 %v229_v53, %v184_v37 }
  0x36   :  { %108 = vadd.xlane.f32.xlu1 %v107_v40 }
  0x37   :  { %84 = vadd.xlane.f32.xlu0 %v83_v41  ;;  %v883_v41 = vsub.s32 %v187_v34, %v184_v37 }
  0x3a   :  { %150 = vmax.xlane.f32.xlu1 %v149_v42  ;;  %v215_v42 = vadd.s32 4294967256, %v182_v32 }
  0x3b   :  { %126 = vmax.xlane.f32.xlu0 %v125_v43 }
  0x3e   :  { %111 = vadd.xlane.f32.xlu1 %v110_v48  ;;  %v893_v48 = vsub.s32 %v208_v39, %v184_v37 }
  0x3f   :  { %87 = vadd.xlane.f32.xlu0 %v86_v49 }
  0x42   :  { %153 = vmax.xlane.f32.xlu1 %v152_v50 }
  0x43   :  { %129 = vmax.xlane.f32.xlu0 %v128_v51  ;;  %v896_v51 = vsub.s32 %v215_v42, %v184_v37 }
  0x46   :  { %114 = vadd.xlane.f32.xlu1 %v113_v56  ;;  %v900_v56 = vsub.s32 %v222_v45, %v184_v37 }
  0x47   :  { %90 = vadd.xlane.f32.xlu0 %v89_v57 }
  0x4a   :  { %156 = vmax.xlane.f32.xlu1 %v155_v58 }
  0x4b   :  { %132 = vmax.xlane.f32.xlu0 %v131_v59 }
  0x4e   :  { %159 = vmax.xlane.f32.xlu1 %v158_v60 }
  0x4f   :  { %135 = vmax.xlane.f32.xlu0 %v134_v61 }
  0x52   :  { %162 = vmax.xlane.f32.xlu1 %v161_v62 }
  0x53   :  { %138 = vmax.xlane.f32.xlu0 %v137_v63 }
  0xa3   :  { %v94_v15 = vpop.xlane.xlu1 %93 }
  0xa4   :  { %v70_v16 = vpop.xlane.xlu0 %69  ;;  %v239_v57 = vrot.slane %v94_v15, %v889_v46 }
  0xa5   :  { %v186_v60 = vrot.slane %v70_v16, %v889_v46 }
  0xa7   :  { %v97_v17 = vpop.xlane.xlu1 %96 }
  0xa8   :  { %v73_v18 = vpop.xlane.xlu0 %72  ;;  %v243_v50 = vrot.slane %v97_v17, %v883_v41 }
  0xa9   :  { %v191_v54 = vrot.slane %v73_v18, %v883_v41 }
  0xaa   :  { %v244_v1 = vsel %vm192_vm2, %v243_v50, %v239_v57 }
  0xab   :  { %v100_v19 = vpop.xlane.xlu1 %99  ;;  %v193_v6 = vsel %vm192_vm2, %v191_v54, %v186_v60 }
  0xac   :  { %v76_v20 = vpop.xlane.xlu0 %75  ;;  %v248_v55 = vrot.slane %v100_v19, %v887_v44 }
  0xad   :  { %v198_v58 = vrot.slane %v76_v20, %v887_v44 }
  0xae   :  { %v249_v7 = vsel %vm199_vm3, %v248_v55, %v244_v1  ;;  %v281_v1 = vld [vmem:[#allocation3] sm:$0x3] }
  0xaf   :  { %v103_v21 = vpop.xlane.xlu1 %102  ;;  %v200_v10 = vsel %vm199_vm3, %v198_v58, %v193_v6 }
  0xb0   :  { %v79_v22 = vpop.xlane.xlu0 %78  ;;  %v253_v59 = vrot.slane %v103_v21, %v891_v47 }
  0xb1   :  { %v205_v61 = vrot.slane %v79_v22, %v891_v47 }
  0xb2   :  { %v254_v11 = vsel %vm206_vm4, %v253_v59, %v249_v7 }
  0xb3   :  { %v869_v23 = vpop.xlane.xlu1 %120  ;;  %v207_v13 = vsel %vm206_vm4, %v205_v61, %v200_v10 }
  0xb4   :  { %v871_v24 = vpop.xlane.xlu0 %117  ;;  %v305_v38 = vrot.slane %v869_v23, %v883_v41 }
  0xb5   :  { %v301_v39 = vrot.slane %v871_v24, %v889_v46 }
  0xb7   :  { %v873_v25 = vpop.xlane.xlu1 %144 }
  0xb8   :  { %v875_v26 = vpop.xlane.xlu0 %141  ;;  %v344_v34 = vrot.slane %v873_v25, %v883_v41 }
  0xbb   :  { %v106_v27 = vpop.xlane.xlu1 %105 }
  0xbc   :  { %v82_v28 = vpop.xlane.xlu0 %81  ;;  %v258_v62 = vrot.slane %v106_v27, %v893_v48 }
  0xbd   :  { %v212_v2 = vrot.slane %v82_v28, %v893_v48 }
  0xbe   :  { %v259_v14 = vsel %vm213_vm5, %v258_v62, %v254_v11 }
  0xbf   :  { %v877_v30 = vpop.xlane.xlu1 %147  ;;  %v214_v16 = vsel %vm213_vm5, %v212_v2, %v207_v13 }
  0xc0   :  { %v879_v31 = vpop.xlane.xlu0 %123  ;;  %v349_v42 = vrot.slane %v877_v30, %v887_v44 }
  0xc3   :  { %v109_v33 = vpop.xlane.xlu1 %108 }
  0xc4   :  { %v85_v35 = vpop.xlane.xlu0 %84  ;;  %v263_v3 = vrot.slane %v109_v33, %v896_v51 }
  0xc5   :  { %v219_v8 = vrot.slane %v85_v35, %v896_v51  ;;  %v340_v35 = vrot.slane %v875_v26, %v889_v46 }
  0xc6   :  { %v264_v17 = vsel %vm220_vm6, %v263_v3, %v259_v14 }
  0xc7   :  { %v881_v40 = vpop.xlane.xlu1 %150  ;;  %v221_v20 = vsel %vm220_vm6, %v219_v8, %v214_v16  ;;  %v345_v23 = vsel %vm192_vm2, %v344_v34, %v340_v35  ;;  %v394_v8 = vld [vmem:[%s993_s2] sm:$0xf]  ;;  %s636_s2 = sshll.u32 %s804_s15, 4  ;;  %s637_s2 = int_to_ptr.vmem [resolvable:$true] %s636_s2 }
  0xc8   :  { %v885_v43 = vpop.xlane.xlu0 %126  ;;  %v354_v25 = vrot.slane %v881_v40, %v891_v47  ;;  %s771_s16 = scalar_lea.vmem %s637_s2, 32  ;;  %p776_p9 = scmp.lt.s32.totalorder %s637_s2, %s637_s2 }
  0xc9   :  { %v315_v26 = vrot.slane %v885_v43, %v891_v47  ;;  %p772_p8 = scmp.ne.s32.totalorder %s637_s2, %s771_s16  ;;  %p777_p10 = scmp.lt.s32.totalorder %s771_s16, %s771_s16 }
  0xcb   :  { %v112_v49 = vpop.xlane.xlu1 %111  ;;  %p778_p11 = por %p777_p10, %p776_p9 }
  0xcc   :  { %v88_v52 = vpop.xlane.xlu0 %87  ;;  %v268_v9 = vrot.slane %v112_v49, %v900_v56  ;;  %v310_v49 = vrot.slane %v879_v31, %v887_v44  ;;  %v306_v31 = vsel %vm192_vm2, %v305_v38, %v301_v39  ;;  %v350_v44 = vsel %vm199_vm3, %v349_v42, %v345_v23 }
  0xcd   :  { %v226_v12 = vrot.slane %v88_v52, %v900_v56  ;;  %v355_v47 = vsel %vm206_vm4, %v354_v25, %v350_v44  ;;  %p779_p12 = pnand %p778_p11, %p772_p8 }
  0xce   :  { %v269_v21 = vsel %vm227_vm7, %v268_v9, %v264_v17  ;;  %v311_v46 = vsel %vm199_vm3, %v310_v49, %v306_v31 }
  0xcf   :  { %v154_v63 = vpop.xlane.xlu1 %153  ;;  %v228_v27 = vsel %vm227_vm7, %v226_v12, %v221_v20  ;;  %v316_v54 = vsel %vm206_vm4, %v315_v26, %v311_v46 }
  0xd0   :  { %v130_v4 = vpop.xlane.xlu0 %129  ;;  %v359_v50 = vrot.slane %v154_v63, %v893_v48 }
  0xd1   :  { %v320_v24 = vrot.slane %v130_v4, %v893_v48 }
  0xd2   :  { %v360_v48 = vsel %vm213_vm5, %v359_v50, %v355_v47 }
  0xd3   :  { %v115_v15 = vpop.xlane.xlu1 %114  ;;  %v321_v57 = vsel %vm213_vm5, %v320_v24, %v316_v54 }
  0xd4   :  { %v273_v18 = vrot.slane %v115_v15, %v911_v5  ;;  %v91_v19 = vpop.xlane.xlu0 %90 }
  0xd5   :  { %v233_v22 = vrot.slane %v91_v19, %v911_v5 }
  0xd6   :  { %v274_v28 = vsel %vm234_vm8, %v273_v18, %v269_v21 }
  0xd7   :  { %v235_v32 = vsel %vm234_vm8, %v233_v22, %v228_v27  ;;  %v157_v33 = vpop.xlane.xlu1 %156 }
  0xd8   :  { %v276_v36 = vsel %vm275_vm9, %v274_v28, %v235_v32  ;;  %v133_v37 = vpop.xlane.xlu0 %132  ;;  %v364_v30 = vrot.slane %v157_v33, %v896_v51 }
  0xd9   :  { %v278_v45 = vadd.f32 %v276_v36, %v164_v29  ;;  %v325_v40 = vrot.slane %v133_v37, %v896_v51 }
  0xda   :  { %v365_v58 = vsel %vm220_vm6, %v364_v30, %v360_v48 }
  0xdb   :  { %v160_v52 = vpop.xlane.xlu1 %159  ;;  %280 = vst.msk [vmem:[#allocation2] sm:$0x3] %vm33_vm0, %v278_v45  ;;  %v326_v60 = vsel %vm220_vm6, %v325_v40, %v321_v57 }
  0xdc   :  { %v136_v41 = vpop.xlane.xlu0 %135  ;;  %v369_v43 = vrot.slane %v160_v52, %v900_v56 }
  0xdd   :  { %v330_v53 = vrot.slane %v136_v41, %v900_v56 }
  0xde   :  { %v370_v61 = vsel %vm227_vm7, %v369_v43, %v365_v58 }
  0xdf   :  { %v163_v55 = vpop.xlane.xlu1 %162  ;;  %v331_v56 = vsel %vm227_vm7, %v330_v53, %v326_v60 }
  0xe0   :  { %v374_v59 = vrot.slane %v163_v55, %v911_v5  ;;  %v139_v51 = vpop.xlane.xlu0 %138 }
  0xe1   :  { %v335_v62 = vrot.slane %v139_v51, %v911_v5 }
  0xe2   :  { %v375_v63 = vsel %vm234_vm8, %v374_v59, %v370_v61  ;;  %v383_v2 = vld [vmem:[#allocation2] sm:$0x3] }
  0xe3   :  { %v336_v3 = vsel %vm234_vm8, %v335_v62, %v331_v56  ;;  %v384_v4 = vmul.f32 0.00390625, %v383_v2 }
  0xe4   :  { %v376_v6 = vsel %vm275_vm9, %v375_v63, %v336_v3 }
  0xe5   :  { %v378_v7 = vmax.f32 %v281_v1, %v376_v6  ;;  %687 = vmatmul.mubr.msk.f32.vlgmr.msra.gmra.mrb[0].mxu0 %vm395_vm10, %v384_v4 }
  0xe6   :  { %710 = vmatprep.mubr.msk.f32.mxu0 %vm803_vm1, %v800_v0  ;;  %709 = vmatpush3.msk.msra.mxu0 %vm549_vm11, %v394_v8 }
  0xe7   :  { %379 = vst.msk [vmem:[#allocation3] sm:$0x3] %vm33_vm0, %v378_v7 }
  0xee   :  { %v385_v5 = vld [vmem:[#allocation3] sm:$0x3] }
  0xef   :  { %706 = vmatmul.mubr.msk.f32.vlgmr.msra.gmra.mrb[0].mxu1 %vm395_vm10, %v385_v5 }
 0x1b8   :  { %v465_v9 = vpop.f32.mrb[0].mxu0 }
 0x1b9   :  { %v688_v10 = vpop.f32.mrb[1].mxu0  ;;  %v469_v12 = vmax.f32 %v465_v9, 0.0 }
 0x1c2   :  { %v539_v11 = vpop.f32.mrb[0].mxu1 }
 0x1c3   :  { %v543_v13 = vmax.f32 %v539_v11, 0.0  ;;  %v707_v14 = vpop.f32.mrb[1].mxu1 }
 0x1c5   :  { %v544_v15 = vadd.f32 %v543_v13, %v469_v12 }
 0x1c7   :  { %711 = vmatmul.mubr.msk.f32.vlgmr.msra.gmra.mrb[2].mxu0 %vm545_vm12, %v544_v15 }
 0x29a   :  { %v619_v0 = vpop.f32.mrb[2].mxu0 }
 0x29b   :  { %v649_v16 = vmul.f32 -1.442695, %v619_v0  ;;  %v712_v17 = vpop.f32.mrb[3].mxu0 }
 0x29d   :  { %745 = vpow2.f32 %v649_v16 }
 0x2a7   :  { %v746_v18 = vpop.eup %745 }
 0x2a8   :  { %v626_v19 = vadd.f32 1.0, %v746_v18 }
 0x2aa   :  { %747 = vrcp.f32 %v626_v19 }
 0x2b4   :  { %v748_v20 = vpop.eup %747 }
 0x2b5   :  { %629 = vst.msk [vmem:[#allocation7] sm:$0x3] %vm33_vm0, %v748_v20 }
 0x2b6   :  { %782 = shalt.err (!%p779_p12)
}
 0x2b7   :  { %s783_s19 = scalar_lea.hbm %s994_s3, 32 }
 0x2b8   :  { %p784_p13 = scmp.ne.s32.totalorder %s994_s3, %s783_s19  ;;  %p787_p0 = scmp.lt.u32.totalorder %s783_s19, %s994_s3 }
 0x2ba   :  { %p789_p1 = pnand %p787_p0, %p784_p13 }
 0x2bc   :  { %792 = shalt.err (!%p789_p1)
}
 0x2bd   :  { %639 = dma.vmem_to_hbm [thread:$0]  %s637_s2, 32, %s994_s3, [#allocation6]  }
 0x2be   :  { %795 = dma.done.wait [#allocation6], 32  }
 0x2bf   :  { %796 = vsyncadd [#allocation6], 4294967264 }
 0x2c0   :  { %643 = vsyncpa [#allocation5], 1 }
 0x2c1   :  { %644 = vsyncpa [#allocation6], 1 }

</bundles_post_ra>
